<compile_context>
chip_gen: v6e
topology: v6e:2x2x1
jax: 0.10.0
libtpu: 0.0.40
codegen_flags: <defaults>
</compile_context>

<pallas_src>
import jax
import jax.numpy as jnp
from jax.experimental import pallas as pl
from jax.experimental.pallas import tpu as pltpu


def _round_up(a, m):
    return ((a + m - 1) // m) * m


def _make_kernel(groups, inv_tau):
    """groups: static tuple of tuples of sorted column indices."""

    def kernel(x_ref, noise_ref, o_ref):
        x = x_ref[...]                                           # (tile_b, F)
        xf = x.astype(jnp.float32)
        logits = xf * jnp.float32(inv_tau) + noise_ref[...]      # (tile_b, F) f32

        # Full-width column index, hoisted out of the per-group loop.
        col = jax.lax.broadcasted_iota(jnp.int32, x.shape, 1)
        n_cols = x.shape[-1]

        result = x                                               # pass-through default
        for idxs in groups:
            lo, hi = idxs[0], idxs[-1]
            if list(idxs) == list(range(lo, hi + 1)):            # contiguous group
                mask = (col >= lo) & (col <= hi)
            else:                                                # arbitrary columns
                mask = (col == idxs[0])
                for c in idxs[1:]:
                    mask = mask | (col == c)

            # Full-width masked max + first-index argmax (lane-aligned, no
            # narrow slices), matching torch.argmax tie-breaking.
            masked = jnp.where(mask, logits, -jnp.inf)
            m = jnp.max(masked, axis=-1, keepdims=True)
            idx_or_big = jnp.where(mask & (masked >= m), col, jnp.int32(n_cols))
            first = jnp.min(idx_or_big, axis=-1, keepdims=True)  # global argmax col
            one_hot = (col == first).astype(result.dtype)
            result = jnp.where(mask, one_hot, result)

        o_ref[...] = result                                      # single lane-dense store

    return kernel


def feature_gumbel_softmax(x, one_hot_index_map, tau=1.0, key=None, tile_b=None):
    """Pallas implementation of FeatureGumbelSoftmax.forward(x, tau)."""
    B, F = x.shape
    groups = tuple(tuple(sorted(int(i) for i in idxs))
                   for idxs in one_hot_index_map.values())

    if key is None:
        key = jax.random.PRNGKey(0)
    noise = jax.random.gumbel(key, (B, F), dtype=jnp.float32)

    itemsize = jnp.dtype(x.dtype).itemsize
    pack = 8 * max(1, 4 // itemsize)      # sublane packing: 8 f32, 16 bf16, 32 int8

    if tile_b is None:
        # Double-buffered (x + f32 noise) inputs + x-dtype output per row; keep
        # the working set around ~8 MiB so the pipeline fits v5e's 16 MiB scoped
        # VMEM default and v7x's 64 MiB physical VMEM with headroom.
        budget = 8 * 1024 * 1024
        bytes_per_row = 2 * (F * itemsize + F * 4 + F * itemsize)
        tile_b = min(1024, max(pack, budget // max(bytes_per_row, 1)))
    tile_b = min(int(tile_b), _round_up(B, pack))
    tile_b = max(pack, (tile_b // pack) * pack)

    Bp = _round_up(B, tile_b)
    if Bp != B:
        x_in = jnp.pad(x, ((0, Bp - B), (0, 0)))
        n_in = jnp.pad(noise, ((0, Bp - B), (0, 0)))
    else:
        x_in, n_in = x, noise

    kernel = _make_kernel(groups, 1.0 / float(tau))
    grid = (Bp // tile_b,)

    out = pl.pallas_call(
        kernel,
        out_shape=jax.ShapeDtypeStruct((Bp, F), x.dtype),
        grid_spec=pltpu.PrefetchScalarGridSpec(
            num_scalar_prefetch=0,
            grid=grid,
            in_specs=[
                pl.BlockSpec((tile_b, F), lambda i: (i, 0)),
                pl.BlockSpec((tile_b, F), lambda i: (i, 0)),
            ],
            out_specs=pl.BlockSpec((tile_b, F), lambda i: (i, 0)),
        ),
        compiler_params=pltpu.CompilerParams(
            dimension_semantics=("parallel",),
            vmem_limit_bytes=32 * 1024 * 1024,
        ),
    )(x_in, n_in)

    return out[:B] if Bp != B else out


if __name__ == "__main__":
    B, F = 16, 16
    # two categorical features, one-hot encoded in contiguous column blocks
    one_hot_index_map = {
        "color": list(range(2, 7)),    # 5 categories -> columns 2..6
        "shape": list(range(9, 13)),   # 4 categories -> columns 9..12
    }

    root = jax.random.PRNGKey(0)
    x_key, noise_key = jax.random.split(root)
    x = jax.random.normal(x_key, (B, F), dtype=jnp.float32)

    out = jax.block_until_ready(
        feature_gumbel_softmax(x, one_hot_index_map, tau=1.0, key=noise_key))

    # --- correctness checks -----------------------------------------------
    group_cols = set()
    for idxs in one_hot_index_map.values():
        group_cols |= set(idxs)
    pass_cols = [c for c in range(F) if c not in group_cols]

    assert out.shape == x.shape and out.dtype == x.dtype

    # pass-through columns unchanged
    assert bool(jnp.allclose(out[:, pass_cols], x[:, pass_cols])), \
        "pass-through columns were modified"

    # each feature group is a valid hard one-hot sample
    for idxs in one_hot_index_map.values():
        seg = out[:, idxs]
        assert bool(jnp.all((seg == 0.0) | (seg == 1.0))), "non-binary one-hot"
        assert bool(jnp.allclose(jnp.sum(seg, axis=-1), 1.0)), "row sum != 1"

    print("KERNEL_OK")
</pallas_src>

<mosaic_0001>
module attributes {stable_mosaic.version = 11 : i64} {
  func.func @kernel(%arg0: i32, %arg1: memref<16x16xf32, #tpu.memory_space<vmem>>, %arg2: memref<16x16xf32, #tpu.memory_space<vmem>>, %arg3: memref<16x16xf32, #tpu.memory_space<vmem>>) attributes {dimension_semantics = [#tpu.dimension_semantics<parallel>], iteration_bounds = array<i64: 1>, scalar_prefetch = 0 : i64, scratch_operands = 0 : i64, tpu.core_type = #tpu.core_type<tc>, window_params = [{transform_indices = @transform_0, window_bounds = array<i64: 16, 16>}, {transform_indices = @transform_1, window_bounds = array<i64: 16, 16>}, {transform_indices = @transform_2, window_bounds = array<i64: 16, 16>}]} {
    %c0 = arith.constant 0 : index
    %c0_0 = arith.constant 0 : index
    %0 = vector.load %arg1[%c0, %c0_0] : memref<16x16xf32, #tpu.memory_space<vmem>>, vector<16x16xf32>
    %cst = arith.constant 1.000000e+00 : f32
    %1 = vector.broadcast %cst : f32 to vector<16x16xf32>
    %2 = arith.mulf %0, %1 : vector<16x16xf32>
    %c0_1 = arith.constant 0 : index
    %c0_2 = arith.constant 0 : index
    %3 = vector.load %arg2[%c0_1, %c0_2] : memref<16x16xf32, #tpu.memory_space<vmem>>, vector<16x16xf32>
    %4 = arith.addf %2, %3 : vector<16x16xf32>
    %5 = tpu.iota {dimensions = array<i32: 1>} : vector<16x16xi32>
    %c2_i32 = arith.constant 2 : i32
    %6 = vector.broadcast %c2_i32 : i32 to vector<16x16xi32>
    %7 = arith.cmpi sge, %5, %6 : vector<16x16xi32>
    %c6_i32 = arith.constant 6 : i32
    %8 = vector.broadcast %c6_i32 : i32 to vector<16x16xi32>
    %9 = arith.cmpi sle, %5, %8 : vector<16x16xi32>
    %10 = arith.andi %7, %9 : vector<16x16xi1>
    %cst_3 = arith.constant 0xFF800000 : f32
    %11 = vector.broadcast %cst_3 : f32 to vector<16x16xf32>
    %12 = arith.select %10, %4, %11 : vector<16x16xi1>, vector<16x16xf32>
    %cst_4 = arith.constant dense<0xFF800000> : vector<16xf32>
    %13 = vector.multi_reduction <maximumf>, %12, %cst_4 [1] : vector<16x16xf32> to vector<16xf32>
    %14 = vector.shape_cast %13 : vector<16xf32> to vector<16x1xf32>
    %15 = vector.broadcast %14 : vector<16x1xf32> to vector<16x16xf32>
    %16 = arith.cmpf oge, %12, %15 : vector<16x16xf32>
    %17 = arith.andi %10, %16 : vector<16x16xi1>
    %c16_i32 = arith.constant 16 : i32
    %18 = vector.broadcast %c16_i32 : i32 to vector<16x16xi32>
    %19 = arith.select %17, %5, %18 : vector<16x16xi1>, vector<16x16xi32>
    %cst_5 = arith.constant dense<2147483647> : vector<16xi32>
    %20 = vector.multi_reduction <minsi>, %19, %cst_5 [1] : vector<16x16xi32> to vector<16xi32>
    %21 = vector.shape_cast %20 : vector<16xi32> to vector<16x1xi32>
    %22 = vector.broadcast %21 : vector<16x1xi32> to vector<16x16xi32>
    %23 = arith.cmpi eq, %5, %22 : vector<16x16xi32>
    %24 = arith.extui %23 : vector<16x16xi1> to vector<16x16xi32>
    %25 = arith.sitofp %24 : vector<16x16xi32> to vector<16x16xf32>
    %26 = arith.select %10, %25, %0 : vector<16x16xi1>, vector<16x16xf32>
    %c9_i32 = arith.constant 9 : i32
    %27 = vector.broadcast %c9_i32 : i32 to vector<16x16xi32>
    %28 = arith.cmpi sge, %5, %27 : vector<16x16xi32>
    %c12_i32 = arith.constant 12 : i32
    %29 = vector.broadcast %c12_i32 : i32 to vector<16x16xi32>
    %30 = arith.cmpi sle, %5, %29 : vector<16x16xi32>
    %31 = arith.andi %28, %30 : vector<16x16xi1>
    %cst_6 = arith.constant 0xFF800000 : f32
    %32 = vector.broadcast %cst_6 : f32 to vector<16x16xf32>
    %33 = arith.select %31, %4, %32 : vector<16x16xi1>, vector<16x16xf32>
    %cst_7 = arith.constant dense<0xFF800000> : vector<16xf32>
    %34 = vector.multi_reduction <maximumf>, %33, %cst_7 [1] : vector<16x16xf32> to vector<16xf32>
    %35 = vector.shape_cast %34 : vector<16xf32> to vector<16x1xf32>
    %36 = vector.broadcast %35 : vector<16x1xf32> to vector<16x16xf32>
    %37 = arith.cmpf oge, %33, %36 : vector<16x16xf32>
    %38 = arith.andi %31, %37 : vector<16x16xi1>
    %c16_i32_8 = arith.constant 16 : i32
    %39 = vector.broadcast %c16_i32_8 : i32 to vector<16x16xi32>
    %40 = arith.select %38, %5, %39 : vector<16x16xi1>, vector<16x16xi32>
    %cst_9 = arith.constant dense<2147483647> : vector<16xi32>
    %41 = vector.multi_reduction <minsi>, %40, %cst_9 [1] : vector<16x16xi32> to vector<16xi32>
    %42 = vector.shape_cast %41 : vector<16xi32> to vector<16x1xi32>
    %43 = vector.broadcast %42 : vector<16x1xi32> to vector<16x16xi32>
    %44 = arith.cmpi eq, %5, %43 : vector<16x16xi32>
    %45 = arith.extui %44 : vector<16x16xi1> to vector<16x16xi32>
    %46 = arith.sitofp %45 : vector<16x16xi32> to vector<16x16xf32>
    %47 = arith.select %31, %46, %26 : vector<16x16xi1>, vector<16x16xf32>
    %c0_10 = arith.constant 0 : index
    %c0_11 = arith.constant 0 : index
    %48 = vector.load %arg3[%c0_10, %c0_11] : memref<16x16xf32, #tpu.memory_space<vmem>>, vector<16x16xf32>
    tpu.vector_store %arg3[%c0_10, %c0_11], %47 {strides = array<i32>} : memref<16x16xf32, #tpu.memory_space<vmem>>, vector<16x16xf32>,
    return
  }
  func.func @transform_0(%arg0: i32) -> (i32, i32) {
    %c0_i32 = arith.constant 0 : i32
    %c0_i32_0 = arith.constant 0 : i32
    return %arg0, %c0_i32 : i32, i32
  }
  func.func @transform_1(%arg0: i32) -> (i32, i32) {
    %c0_i32 = arith.constant 0 : i32
    %c0_i32_0 = arith.constant 0 : i32
    return %arg0, %c0_i32 : i32, i32
  }
  func.func @transform_2(%arg0: i32) -> (i32, i32) {
    %c0_i32 = arith.constant 0 : i32
    %c0_i32_0 = arith.constant 0 : i32
    return %arg0, %c0_i32 : i32, i32
  }
}

</mosaic_0001>

<bundles_post_ra>
// kernel: tpu_custom_call.1
= control target key start
LH: loop header
LB: loop body
LE: loop exit
PB: predicated region body
PF: predicated region fallthrough
CT: control target
= control target key end

     0   :  { %7 = vsyncpa [#allocation3], 0  ;;  %s358_s0 = inlined_call_operand.hbm [shape: f32[16,16], index: 0, kind: input, shape index: {}]   ;;  %s359_s1 = inlined_call_operand.hbm [shape: f32[16,16], index: 1, kind: input, shape index: {}]   ;;  %s360_s2 = inlined_call_operand.hbm [shape: f32[16,16], index: 2, kind: output, shape index: {}]  }
   0x1   :  { %8 = vsyncpa [#allocation6], 0 }
   0x2   :  { %9 = vsyncpa [#allocation4], 0  ;;  %s255_s9 = smov [#allocation2]  }
   0x3   :  { %s15_s10 = sshll.u32 %s255_s9, 4  ;;  %s16_s10 = int_to_ptr.vmem [resolvable:$true] %s15_s10 }
   0x4   :  { %s197_s11 = scalar_lea.vmem %s16_s10, 256  ;;  %p202_p1 = scmp.lt.s32.totalorder %s16_s10, %s16_s10 }
   0x5   :  { %p198_p0 = scmp.ne.s32.totalorder %s16_s10, %s197_s11  ;;  %p203_p2 = scmp.lt.s32.totalorder %s197_s11, %s197_s11 }
   0x7   :  { %p204_p3 = por %p203_p2, %p202_p1 }
   0x9   :  { %p205_p4 = pnand %p204_p3, %p198_p0 }
   0xb   :  { %208 = shalt.err (!%p205_p4)
}
   0xc   :  { %s256_s12 = smov 128   ;;  %s257_s13 = smov 8  }
   0xd   :  { %21 = dma.hbm_to_vmem [thread:$0]  %s358_s0, 256, %s16_s10, [#allocation3], %s256_s12, %s256_s12, %s257_s13  }
   0xe   :  { %s258_s16 = smov [#allocation5]  }
   0xf   :  { %s27_s17 = sshll.u32 %s258_s16, 4  ;;  %s28_s17 = int_to_ptr.vmem [resolvable:$true] %s27_s17 }
  0x10   :  { %s217_s18 = scalar_lea.vmem %s28_s17, 256  ;;  %p222_p6 = scmp.lt.s32.totalorder %s28_s17, %s28_s17 }
  0x11   :  { %p218_p5 = scmp.ne.s32.totalorder %s28_s17, %s217_s18  ;;  %p223_p7 = scmp.lt.s32.totalorder %s217_s18, %s217_s18 }
  0x13   :  { %p224_p8 = por %p223_p7, %p222_p6 }
  0x15   :  { %p225_p9 = pnand %p224_p8, %p218_p5 }
  0x17   :  { %228 = shalt.err (!%p225_p9)
}
  0x18   :  { %33 = dma.hbm_to_vmem [thread:$0]  %s359_s1, 256, %s28_s17, [#allocation6], %s256_s12, %s256_s12, %s257_s13  }
  0x19   :  { %249 = dma.done.wait [#allocation3], 256  }
  0x1a   :  { %250 = vsyncadd [#allocation3], 4294967040 }
  0x1b   :  { %251 = dma.done.wait [#allocation6], 256  }
  0x1c   :  { %252 = vsyncadd [#allocation6], 4294967040  ;;  %v46_v0 = vlaneseq  ;;  %v302_v4 = vld [vmem:[#allocation2] sm:$0xff]  ;;  %v42_v5 = vld [vmem:[#allocation5] sm:$0xff]  ;;  %vm53_vm6 = vcmask 130048   ;;  %s260_s0 = smov [#allocation7]  }
  0x1d   :  { %v304_v6 = vld [vmem:[#allocation2 + $0x8] sm:$0xff]  ;;  %v44_v7 = vadd.f32 %v42_v5, %v302_v4  ;;  %v43_v8 = vld [vmem:[#allocation5 + $0x8] sm:$0xff]  ;;  %s166_s1 = sshll.u32 %s260_s0, 4  ;;  %s167_s1 = int_to_ptr.vmem [resolvable:$true] %s166_s1 }
  0x1e   :  { %v288_v1 = vand.u32 127, %v46_v0  ;;  %v45_v9 = vadd.f32 %v43_v8, %v304_v6  ;;  %s229_s21 = scalar_lea.vmem %s167_s1, 256  ;;  %p234_p11 = scmp.lt.s32.totalorder %s167_s1, %s167_s1 }
  0x1f   :  { %p230_p10 = scmp.ne.s32.totalorder %s167_s1, %s229_s21  ;;  %p235_p12 = scmp.lt.s32.totalorder %s229_s21, %s229_s21 }
  0x20   :  { %vm48_vm0 = vcmp.ge.s32.totalorder %v288_v1, 2  ;;  %vm49_vm1 = vcmp.le.s32.totalorder %v288_v1, 6  ;;  %vm104_vm2 = vcmp.ge.s32.totalorder %v288_v1, 9  ;;  %vm105_vm3 = vcmp.le.s32.totalorder %v288_v1, 12 }
  0x21   :  { %vm294_vm4 = vmand %vm48_vm0, %vm49_vm1  ;;  %p236_p13 = por %p235_p12, %p234_p11 }
  0x22   :  { %vm298_vm5 = vmand %vm104_vm2, %vm105_vm3  ;;  %v51_v10 = vsel %vm294_vm4, %v44_v7, -inf  ;;  %v52_v14 = vsel %vm294_vm4, %v45_v9, -inf }
  0x23   :  { %v107_v11 = vsel %vm298_vm5, %v44_v7, -inf  ;;  %v54_v12 = vsel %vm53_vm6, %v51_v10, -inf  ;;  %v108_v15 = vsel %vm298_vm5, %v45_v9, -inf  ;;  %v57_v16 = vsel %vm53_vm6, %v52_v14, -inf  ;;  %p237_p0 = pnand %p236_p13, %p230_p10 }
  0x24   :  { %v109_v13 = vsel %vm53_vm6, %v107_v11, -inf  ;;  %55 = vmax.xlane.f32.xlu0 %v54_v12  ;;  %v112_v17 = vsel %vm53_vm6, %v108_v15, -inf  ;;  %v259_v9 = vmov 0.0  }
  0x25   :  { %110 = vmax.xlane.f32.xlu1 %v109_v13 }
  0x28   :  { %58 = vmax.xlane.f32.xlu0 %v57_v16 }
  0x29   :  { %113 = vmax.xlane.f32.xlu1 %v112_v17 }
  0xad   :  { %v56_v18 = vpop.xlane.xlu0 %55 }
  0xae   :  { %v111_v19 = vpop.xlane.xlu1 %110  ;;  %vm60_vm7 = vcmp.ge.f32.partialorder %v51_v10, %v56_v18 }
  0xaf   :  { %vm115_vm8 = vcmp.ge.f32.partialorder %v107_v11, %v111_v19  ;;  %vm62_vm9 = vmand %vm294_vm4, %vm60_vm7 }
  0xb0   :  { %v64_v20 = vsel %vm62_vm9, %v288_v1, 16  ;;  %vm117_vm10 = vmand %vm298_vm5, %vm115_vm8 }
  0xb1   :  { %v119_v21 = vsel %vm117_vm10, %v288_v1, 16  ;;  %v59_v22 = vpop.xlane.xlu0 %58  ;;  %v66_v24 = vsel %vm53_vm6, %v64_v20, 2147483647 }
  0xb2   :  { %v114_v23 = vpop.xlane.xlu1 %113  ;;  %vm61_vm11 = vcmp.ge.f32.partialorder %v52_v14, %v59_v22  ;;  %v68_v25 = vshra.s32 %v66_v24, 16  ;;  %v121_v26 = vsel %vm53_vm6, %v119_v21, 2147483647  ;;  %v67_v38 = vand.u32 65535, %v66_v24 }
  0xb3   :  { %vm116_vm12 = vcmp.ge.f32.partialorder %v108_v15, %v114_v23  ;;  %vm63_vm13 = vmand %vm294_vm4, %vm61_vm11  ;;  %v123_v27 = vshra.s32 %v121_v26, 16  ;;  %v122_v42 = vand.u32 65535, %v121_v26 }
  0xb4   :  { %v65_v28 = vsel %vm63_vm13, %v288_v1, 16  ;;  %vm118_vm14 = vmand %vm298_vm5, %vm116_vm12  ;;  %v70_v29 = vcvt.s32.f32 %v68_v25  ;;  %v69_v40 = vcvt.s32.f32 %v67_v38 }
  0xb5   :  { %v120_v30 = vsel %vm118_vm14, %v288_v1, 16  ;;  %v81_v31 = vsel %vm53_vm6, %v65_v28, 2147483647  ;;  %v125_v32 = vcvt.s32.f32 %v123_v27  ;;  %v124_v47 = vcvt.s32.f32 %v122_v42 }
  0xb6   :  { %71 = vmin.xlane.f32.xlu0 %v70_v29  ;;  %v83_v33 = vshra.s32 %v81_v31, 16  ;;  %v136_v34 = vsel %vm53_vm6, %v120_v30, 2147483647  ;;  %v82_v41 = vand.u32 65535, %v81_v31 }
  0xb7   :  { %v138_v35 = vshra.s32 %v136_v34, 16  ;;  %v137_v48 = vand.u32 65535, %v136_v34 }
  0xb8   :  { %v85_v36 = vcvt.s32.f32 %v83_v33  ;;  %v84_v46 = vcvt.s32.f32 %v82_v41 }
  0xb9   :  { %v140_v37 = vcvt.s32.f32 %v138_v35  ;;  %v139_v52 = vcvt.s32.f32 %v137_v48 }
  0xba   :  { %126 = vmin.xlane.f32.xlu0 %v125_v32  ;;  %86 = vmin.xlane.f32.xlu1 %v85_v36 }
  0xbe   :  { %141 = vmin.xlane.f32.xlu1 %v140_v37 }
 0x13f   :  { %v72_v39 = vpop.xlane.xlu0 %71 }
 0x140   :  { %vm73_vm15 = vcmp.eq.f32.partialorder %v70_v29, %v72_v39  ;;  %v78_v54 = vcvt.f32.s32 %v72_v39 }
 0x141   :  { %v74_v43 = vsel %vm73_vm15, %v69_v40, inf }
 0x142   :  { %75 = vmin.xlane.f32.xlu0 %v74_v43  ;;  %v79_v58 = vshll.u32 %v78_v54, 16 }
 0x143   :  { %v87_v44 = vpop.xlane.xlu1 %86  ;;  %v127_v45 = vpop.xlane.xlu0 %126 }
 0x144   :  { %vm88_vm0 = vcmp.eq.f32.partialorder %v85_v36, %v87_v44  ;;  %vm128_vm1 = vcmp.eq.f32.partialorder %v125_v32, %v127_v45  ;;  %v93_v55 = vcvt.f32.s32 %v87_v44  ;;  %v133_v56 = vcvt.f32.s32 %v127_v45 }
 0x145   :  { %v89_v49 = vsel %vm88_vm0, %v84_v46, inf  ;;  %v129_v50 = vsel %vm128_vm1, %v124_v47, inf }
 0x146   :  { %90 = vmin.xlane.f32.xlu1 %v89_v49  ;;  %130 = vmin.xlane.f32.xlu0 %v129_v50  ;;  %v94_v61 = vshll.u32 %v93_v55, 16  ;;  %v134_v62 = vshll.u32 %v133_v56, 16 }
 0x147   :  { %v142_v51 = vpop.xlane.xlu1 %141 }
 0x148   :  { %vm143_vm2 = vcmp.eq.f32.partialorder %v140_v37, %v142_v51  ;;  %v148_v5 = vcvt.f32.s32 %v142_v51 }
 0x149   :  { %v144_v53 = vsel %vm143_vm2, %v139_v52, inf }
 0x14a   :  { %145 = vmin.xlane.f32.xlu1 %v144_v53  ;;  %v149_v14 = vshll.u32 %v148_v5, 16 }
 0x1cb   :  { %v76_v57 = vpop.xlane.xlu0 %75 }
 0x1cc   :  { %v77_v59 = vcvt.f32.s32 %v76_v57 }
 0x1ce   :  { %v80_v60 = vadd.s32 %v79_v58, %v77_v59 }
 0x1cf   :  { %v91_v63 = vpop.xlane.xlu1 %90  ;;  %v131_v0 = vpop.xlane.xlu0 %130 }
 0x1d0   :  { %vm96_vm3 = vcmp.eq.s32.totalorder %v288_v1, %v80_v60  ;;  %v92_v7 = vcvt.f32.s32 %v91_v63  ;;  %v132_v8 = vcvt.f32.s32 %v131_v0 }
 0x1d1   :  { %v179_v10 = vsel %vm96_vm3, 1.0, %v259_v9 }
 0x1d2   :  { %v95_v11 = vadd.s32 %v94_v61, %v92_v7  ;;  %v135_v12 = vadd.s32 %v134_v62, %v132_v8  ;;  %v102_v16 = vsel %vm294_vm4, %v179_v10, %v302_v4 }
 0x1d3   :  { %v146_v13 = vpop.xlane.xlu1 %145 }
 0x1d4   :  { %vm97_vm7 = vcmp.eq.s32.totalorder %v288_v1, %v95_v11  ;;  %vm151_vm8 = vcmp.eq.s32.totalorder %v288_v1, %v135_v12  ;;  %v147_v15 = vcvt.f32.s32 %v146_v13 }
 0x1d5   :  { %v181_v17 = vsel %vm151_vm8, 1.0, %v259_v9  ;;  %v180_v18 = vsel %vm97_vm7, 1.0, %v259_v9 }
 0x1d6   :  { %v150_v19 = vadd.s32 %v149_v14, %v147_v15  ;;  %v157_v20 = vsel %vm298_vm5, %v181_v17, %v102_v16  ;;  %v103_v21 = vsel %vm294_vm4, %v180_v18, %v304_v6 }
 0x1d7   :  { %159 = vst.msk [vmem:[#allocation7] sm:$0xff] %vm53_vm6, %v157_v20 }
 0x1d8   :  { %vm152_vm9 = vcmp.eq.s32.totalorder %v288_v1, %v150_v19 }
 0x1d9   :  { %v182_v22 = vsel %vm152_vm9, 1.0, %v259_v9 }
 0x1da   :  { %v158_v4 = vsel %vm298_vm5, %v182_v22, %v103_v21 }
 0x1db   :  { %160 = vst.msk [vmem:[#allocation7 + $0x8] sm:$0xff] %vm53_vm6, %v158_v4 }
 0x1dc   :  { %240 = shalt.err (!%p237_p0)
}
 0x1dd   :  { %172 = dma.vmem_to_hbm [thread:$0]  %s167_s1, 256, %s360_s2, [#allocation4], %s256_s12, %s256_s12, %s257_s13  }
 0x1de   :  { %253 = dma.done.wait [#allocation4], 256  }
 0x1df   :  { %254 = vsyncadd [#allocation4], 4294967040 }
 0x1e0   :  { %176 = vsyncpa [#allocation3], 1 }
 0x1e1   :  { %177 = vsyncpa [#allocation6], 1 }
 0x1e2   :  { %178 = vsyncpa [#allocation4], 1 }

</bundles_post_ra>
